<compile_context>
chip_gen: v7x
topology: tpu7x:2x2x1
jax: 0.10.0
libtpu: 0.0.40
codegen_flags: <defaults>
</compile_context>

<pallas_src>
import math

import jax
import jax.numpy as jnp
from jax.experimental import pallas as pl
from jax.experimental.pallas import tpu as pltpu

BN_EPS = 1e-5
LANE = 128
SUBLANE = 8  # x / out blocks are f32 -> 8-row sublane alignment


def _round_up(n, m):
    return ((n + m - 1) // m) * m


def _make_fc_kernel(n_hidden: int, compute_dtype):
    """Fused kernel: n_hidden x (Linear -> tanh) blocks + final Linear.

    BatchNorm has been folded into the Linear weights/bias ahead of time.
    Matmul operands are `compute_dtype` (bf16 by default); accumulation, bias
    add and tanh are f32.
    """

    def kernel(x_ref, *refs):
        out_ref = refs[-1]
        p = refs[:-1]  # [W0, b0, W1, b1, ..., W_last, b_last]  (BN pre-folded)

        h = x_ref[...].astype(compute_dtype)
        for i in range(n_hidden):
            w = p[2 * i][...]        # (Kpad, Npad), compute_dtype
            b = p[2 * i + 1][...]    # (1,   Npad), f32
            z = jnp.dot(h, w, preferred_element_type=jnp.float32) + b
            h = jnp.tanh(z).astype(compute_dtype)  # f32 tanh on EUP, cast for MXU
            # Dropout -> identity at inference

        w = p[2 * n_hidden][...]
        b = p[2 * n_hidden + 1][...]
        out_ref[...] = (
            jnp.dot(h, w, preferred_element_type=jnp.float32) + b
        ).astype(out_ref.dtype)

    return kernel


def init_fc_params(dims, key):
    """Deterministic init mirroring FCNetwork.make_seq + init_weights.

    Linear: xavier_uniform weights, bias = 0.01 (stored as (in, out): y = x @ W).
    BatchNorm1d: gamma=1, beta=0, running_mean=0, running_var=1.
    Returns the flat list [gamma, beta, rmean, rvar, W, b] * n_hidden + [W, b].
    """
    params = []
    n_hidden = len(dims) - 2

    def xavier_uniform(k, fan_in, fan_out):
        bound = math.sqrt(6.0 / (fan_in + fan_out))
        return jax.random.uniform(
            k, (fan_in, fan_out), dtype=jnp.float32, minval=-bound, maxval=bound
        )

    keys = jax.random.split(key, len(dims) - 1)
    for i in range(n_hidden):
        din, dout = dims[i], dims[i + 1]
        params.append(jnp.ones((1, din), jnp.float32))        # gamma
        params.append(jnp.zeros((1, din), jnp.float32))       # beta
        params.append(jnp.zeros((1, din), jnp.float32))       # running_mean
        params.append(jnp.ones((1, din), jnp.float32))        # running_var
        params.append(xavier_uniform(keys[i], din, dout))      # W
        params.append(jnp.full((1, dout), 0.01, jnp.float32))  # b
    din, dout = dims[-2], dims[-1]
    params.append(xavier_uniform(keys[-1], din, dout))          # final W
    params.append(jnp.full((1, dout), 0.01, jnp.float32))       # final b
    return params


def fold_bn_and_pad_params(params, dims, weight_dtype=jnp.bfloat16):
    """Fold eval-mode BN into Linear weights/bias, pad N dims to 128 lanes and
    cast weights to `weight_dtype` (biases stay f32).

    Returns [W0', b0', ..., Wlast', blast'] where:
      W' = diag(s) @ W  (rows scaled by s),  b' = (beta - mean*s) @ W + b,
      s  = gamma / sqrt(running_var + eps),
    zero-padded so every weight has K = previous padded width (first layer keeps
    the true input width) and N = round_up(width, 128).
    """
    n_hidden = len(dims) - 2
    fused = []
    idx = 0
    k_pad = dims[0]  # input dim stays unpadded (x is fed as-is)
    for i in range(n_hidden):
        gamma, beta, rmean, rvar, w, b = params[idx : idx + 6]
        idx += 6
        s = gamma / jnp.sqrt(rvar + BN_EPS)                 # (1, Din)
        w_f = w * s.reshape(-1, 1)                          # (Din, Dout)
        b_f = b + (beta - rmean * s) @ w                    # (1, Dout)
        n_pad = _round_up(dims[i + 1], LANE)
        w_p = jnp.pad(w_f, ((0, k_pad - w_f.shape[0]), (0, n_pad - w_f.shape[1])))
        b_p = jnp.pad(b_f, ((0, 0), (0, n_pad - b_f.shape[1])))
        fused += [w_p.astype(weight_dtype), b_p.astype(jnp.float32)]
        k_pad = n_pad
    w, b = params[idx], params[idx + 1]
    n_pad = _round_up(dims[-1], LANE)
    w_p = jnp.pad(w, ((0, k_pad - w.shape[0]), (0, n_pad - w.shape[1])))
    b_p = jnp.pad(b, ((0, 0), (0, n_pad - b.shape[1])))
    fused += [w_p.astype(weight_dtype), b_p.astype(jnp.float32)]
    return fused


def fc_forward(x, params, dims, *, tile_b=512, compute_dtype=jnp.bfloat16):
    """Fused FCNetwork eval-mode forward as a single Pallas call."""
    n_hidden = len(dims) - 2
    fused = fold_bn_and_pad_params(params, dims, weight_dtype=compute_dtype)

    batch = x.shape[0]
    din = dims[0]
    dout_pad = fused[-1].shape[1]

    # --- batch tiling ------------------------------------------------------
    # >= 2 tiles once batch >= 16 so the "parallel" grid axis can shard across
    # v7x's two TensorCores; tile rounded to the 8-row sublane so padding is
    # bounded by (n_tiles * 8 - 1) rows instead of ~tile_b.
    n_tiles = pl.cdiv(batch, tile_b)
    if batch >= 16:
        n_tiles = max(n_tiles, 2)
    tb = _round_up(pl.cdiv(batch, n_tiles), SUBLANE)
    padded_batch = _round_up(batch, tb)
    if padded_batch != batch:
        x = jnp.pad(x, ((0, padded_batch - batch), (0, 0)))
    grid = (padded_batch // tb,)

    # --- block specs --------------------------------------------------------
    in_specs = [pl.BlockSpec((tb, din), lambda i: (i, 0))]
    for arr in fused:
        # Whole weight/bias resident across all batch tiles (constant index
        # map). Single-buffered: it is never re-fetched, double-buffering it
        # would only waste VMEM.
        in_specs.append(
            pl.BlockSpec(arr.shape, lambda i: (0, 0), pipeline_mode=pl.Buffered(1))
        )
    out_specs = pl.BlockSpec((tb, dout_pad), lambda i: (i, 0))

    # --- VMEM budget / cost estimate ----------------------------------------
    resident_bytes = sum(int(a.size) * a.dtype.itemsize for a in fused)  # Buffered(1)
    max_npad = max(int(a.shape[1]) for a in fused[::2])
    stream_bytes = 2 * tb * din * x.dtype.itemsize            # x tile, double-buffered
    stream_bytes += 2 * tb * dout_pad * jnp.dtype(x.dtype).itemsize  # out tile
    act_bytes = 4 * tb * max_npad * 4                          # in-body intermediates
    vmem_limit = int(
        min(max(2 * (resident_bytes + stream_bytes + act_bytes), 32 << 20), 64 << 20)
    )

    flops = 0
    trans = 0
    bytes_acc = x.dtype.itemsize * padded_batch * (din + dout_pad)
    for li in range(n_hidden + 1):
        w_arr, b_arr = fused[2 * li], fused[2 * li + 1]
        flops += 2 * padded_batch * int(w_arr.shape[0]) * int(w_arr.shape[1])
        bytes_acc += int(w_arr.size) * w_arr.dtype.itemsize
        bytes_acc += int(b_arr.size) * b_arr.dtype.itemsize
        if li < n_hidden:
            trans += padded_batch * int(w_arr.shape[1])  # tanh per hidden activation

    out_padded = pl.pallas_call(
        _make_fc_kernel(n_hidden, compute_dtype),
        out_shape=jax.ShapeDtypeStruct((padded_batch, dout_pad), x.dtype),
        grid=grid,
        in_specs=in_specs,
        out_specs=out_specs,
        compiler_params=pltpu.CompilerParams(
            dimension_semantics=("parallel",),
            vmem_limit_bytes=vmem_limit,
        ),
        cost_estimate=pl.CostEstimate(
            flops=flops, transcendentals=trans, bytes_accessed=bytes_acc
        ),
    )(x, *fused)

    # TODO(synk): for mem-bound large batches, let the consumer read the padded
    # (batch, dout_pad) buffer directly / emit bf16 to avoid this slice copy.
    return out_padded[:batch, : dims[-1]]


def fc_forward_ref(x, params, dims):
    """Pure-JAX f32 reference (un-fused, un-padded) for correctness checking."""
    n_hidden = len(dims) - 2
    h = x.astype(jnp.float32)
    idx = 0
    for _ in range(n_hidden):
        gamma, beta, rmean, rvar, w, b = params[idx : idx + 6]
        idx += 6
        h = (h - rmean) / jnp.sqrt(rvar + BN_EPS) * gamma + beta
        h = jnp.tanh(h @ w + b)
    w, b = params[idx], params[idx + 1]
    return (h @ w + b).astype(x.dtype)


if __name__ == "__main__":
    # FCNetwork(dims=(32, 64, 64, 16), dropout_prob=0.1) -- dropout inert at inference
    dims = (32, 64, 64, 16)
    batch = 8

    key = jax.random.PRNGKey(0)
    kx, kp = jax.random.split(key)

    x = jax.random.normal(kx, (batch, dims[0]), dtype=jnp.float32)
    params = init_fc_params(dims, kp)
    ref = fc_forward_ref(x, params, dims)

    # f32 compute path: tight check of the fused/folded/padded kernel itself.
    out_f32 = jax.block_until_ready(
        fc_forward(x, params, dims, compute_dtype=jnp.float32)
    )
    assert out_f32.shape == (batch, dims[-1])
    assert jnp.allclose(out_f32, ref, atol=1e-5, rtol=1e-5), \
        "Pallas f32 output mismatch vs reference"

    # Default bf16-MXU path: relaxed tolerance (bf16 operand rounding).
    out = jax.block_until_ready(fc_forward(x, params, dims))
    assert out.shape == (batch, dims[-1])
    assert jnp.allclose(out, ref, atol=3e-2, rtol=3e-2), \
        "Pallas bf16 output mismatch vs reference"

    print("KERNEL_OK")
</pallas_src>

<mosaic_0001>
module attributes {stable_mosaic.version = 11 : i64} {
  func.func @kernel(%arg0: i32, %arg1: memref<8x32xf32, #tpu.memory_space<vmem>>, %arg2: memref<32x128xf32, #tpu.memory_space<vmem>>, %arg3: memref<1x128xf32, #tpu.memory_space<vmem>>, %arg4: memref<128x128xf32, #tpu.memory_space<vmem>>, %arg5: memref<1x128xf32, #tpu.memory_space<vmem>>, %arg6: memref<128x128xf32, #tpu.memory_space<vmem>>, %arg7: memref<1x128xf32, #tpu.memory_space<vmem>>, %arg8: memref<8x128xf32, #tpu.memory_space<vmem>>) attributes {dimension_semantics = [#tpu.dimension_semantics<parallel>], iteration_bounds = array<i64: 1>, scalar_prefetch = 0 : i64, scratch_operands = 0 : i64, tpu.core_type = #tpu.core_type<tc>, window_params = [{transform_indices = @transform_0, window_bounds = array<i64: 8, 32>}, {pipeline_mode = #tpu.pipeline_mode<synchronous>, transform_indices = @transform_1, window_bounds = array<i64: 32, 128>}, {pipeline_mode = #tpu.pipeline_mode<synchronous>, transform_indices = @transform_2, window_bounds = array<i64: 1, 128>}, {pipeline_mode = #tpu.pipeline_mode<synchronous>, transform_indices = @transform_3, window_bounds = array<i64: 128, 128>}, {pipeline_mode = #tpu.pipeline_mode<synchronous>, transform_indices = @transform_4, window_bounds = array<i64: 1, 128>}, {pipeline_mode = #tpu.pipeline_mode<synchronous>, transform_indices = @transform_5, window_bounds = array<i64: 128, 128>}, {pipeline_mode = #tpu.pipeline_mode<synchronous>, transform_indices = @transform_6, window_bounds = array<i64: 1, 128>}, {transform_indices = @transform_7, window_bounds = array<i64: 8, 128>}]} {
    %c0 = arith.constant 0 : index
    %c0_0 = arith.constant 0 : index
    %0 = vector.load %arg1[%c0, %c0_0] : memref<8x32xf32, #tpu.memory_space<vmem>>, vector<8x32xf32>
    %c0_1 = arith.constant 0 : index
    %c0_2 = arith.constant 0 : index
    %1 = vector.load %arg2[%c0_1, %c0_2] : memref<32x128xf32, #tpu.memory_space<vmem>>, vector<32x128xf32>
    %c0_3 = arith.constant 0 : index
    %c0_4 = arith.constant 0 : index
    %2 = vector.load %arg3[%c0_3, %c0_4] : memref<1x128xf32, #tpu.memory_space<vmem>>, vector<1x128xf32>
    %cst = arith.constant dense<0.000000e+00> : vector<8x128xf32>
    %3 = tpu.matmul %0, %1, %cst {dimension_numbers = #tpu.dot_dimension_numbers<[1], [0], [0], [1], [0, 0, 1, 1], [], []>} : vector<8x32xf32>, vector<32x128xf32>, vector<8x128xf32> -> vector<8x128xf32>
    %4 = vector.broadcast %2 : vector<1x128xf32> to vector<8x128xf32>
    %5 = arith.addf %3, %4 : vector<8x128xf32>
    %6 = math.tanh %5 : vector<8x128xf32>
    %c0_5 = arith.constant 0 : index
    %c0_6 = arith.constant 0 : index
    %7 = vector.load %arg4[%c0_5, %c0_6] : memref<128x128xf32, #tpu.memory_space<vmem>>, vector<128x128xf32>
    %c0_7 = arith.constant 0 : index
    %c0_8 = arith.constant 0 : index
    %8 = vector.load %arg5[%c0_7, %c0_8] : memref<1x128xf32, #tpu.memory_space<vmem>>, vector<1x128xf32>
    %cst_9 = arith.constant dense<0.000000e+00> : vector<8x128xf32>
    %9 = tpu.matmul %6, %7, %cst_9 {dimension_numbers = #tpu.dot_dimension_numbers<[1], [0], [0], [1], [0, 0, 1, 1], [], []>} : vector<8x128xf32>, vector<128x128xf32>, vector<8x128xf32> -> vector<8x128xf32>
    %10 = vector.broadcast %8 : vector<1x128xf32> to vector<8x128xf32>
    %11 = arith.addf %9, %10 : vector<8x128xf32>
    %12 = math.tanh %11 : vector<8x128xf32>
    %c0_10 = arith.constant 0 : index
    %c0_11 = arith.constant 0 : index
    %13 = vector.load %arg6[%c0_10, %c0_11] : memref<128x128xf32, #tpu.memory_space<vmem>>, vector<128x128xf32>
    %c0_12 = arith.constant 0 : index
    %c0_13 = arith.constant 0 : index
    %14 = vector.load %arg7[%c0_12, %c0_13] : memref<1x128xf32, #tpu.memory_space<vmem>>, vector<1x128xf32>
    %cst_14 = arith.constant dense<0.000000e+00> : vector<8x128xf32>
    %15 = tpu.matmul %12, %13, %cst_14 {dimension_numbers = #tpu.dot_dimension_numbers<[1], [0], [0], [1], [0, 0, 1, 1], [], []>} : vector<8x128xf32>, vector<128x128xf32>, vector<8x128xf32> -> vector<8x128xf32>
    %16 = vector.broadcast %14 : vector<1x128xf32> to vector<8x128xf32>
    %17 = arith.addf %15, %16 : vector<8x128xf32>
    %c0_15 = arith.constant 0 : index
    %c0_16 = arith.constant 0 : index
    %18 = vector.load %arg8[%c0_15, %c0_16] : memref<8x128xf32, #tpu.memory_space<vmem>>, vector<8x128xf32>
    tpu.vector_store %arg8[%c0_15, %c0_16], %17 {strides = array<i32>} : memref<8x128xf32, #tpu.memory_space<vmem>>, vector<8x128xf32>,
    return
  }
  func.func @transform_0(%arg0: i32) -> (i32, i32) {
    %c0_i32 = arith.constant 0 : i32
    %c0_i32_0 = arith.constant 0 : i32
    return %arg0, %c0_i32 : i32, i32
  }
  func.func @transform_1(%arg0: i32) -> (i32, i32) {
    %c0_i32 = arith.constant 0 : i32
    %c0_i32_0 = arith.constant 0 : i32
    %c0_i32_1 = arith.constant 0 : i32
    return %c0_i32, %c0_i32_0 : i32, i32
  }
  func.func @transform_2(%arg0: i32) -> (i32, i32) {
    %c0_i32 = arith.constant 0 : i32
    %c0_i32_0 = arith.constant 0 : i32
    %c0_i32_1 = arith.constant 0 : i32
    return %c0_i32, %c0_i32_0 : i32, i32
  }
  func.func @transform_3(%arg0: i32) -> (i32, i32) {
    %c0_i32 = arith.constant 0 : i32
    %c0_i32_0 = arith.constant 0 : i32
    %c0_i32_1 = arith.constant 0 : i32
    return %c0_i32, %c0_i32_0 : i32, i32
  }
  func.func @transform_4(%arg0: i32) -> (i32, i32) {
    %c0_i32 = arith.constant 0 : i32
    %c0_i32_0 = arith.constant 0 : i32
    %c0_i32_1 = arith.constant 0 : i32
    return %c0_i32, %c0_i32_0 : i32, i32
  }
  func.func @transform_5(%arg0: i32) -> (i32, i32) {
    %c0_i32 = arith.constant 0 : i32
    %c0_i32_0 = arith.constant 0 : i32
    %c0_i32_1 = arith.constant 0 : i32
    return %c0_i32, %c0_i32_0 : i32, i32
  }
  func.func @transform_6(%arg0: i32) -> (i32, i32) {
    %c0_i32 = arith.constant 0 : i32
    %c0_i32_0 = arith.constant 0 : i32
    %c0_i32_1 = arith.constant 0 : i32
    return %c0_i32, %c0_i32_0 : i32, i32
  }
  func.func @transform_7(%arg0: i32) -> (i32, i32) {
    %c0_i32 = arith.constant 0 : i32
    %c0_i32_0 = arith.constant 0 : i32
    return %arg0, %c0_i32 : i32, i32
  }
}

</mosaic_0001>

<bundles_post_ra>
// kernel: tpu_custom_call.1
= control target key start
LH: loop header
LB: loop body
LE: loop exit
PB: predicated region body
PF: predicated region fallthrough
CT: control target
= control target key end

     0   :  { %12 = vsyncpa [#allocation3], 0  ;;  %s831_s0 = inlined_call_operand.hbm [shape: f32[8,32], index: 0, kind: input, shape index: {}]   ;;  %s832_s1 = inlined_call_operand.hbm [shape: f32[32,128], index: 1, kind: input, shape index: {}]   ;;  %s833_s2 = inlined_call_operand.vmem [shape: f32[1,128], index: 2, kind: input, shape index: {}]   ;;  %s834_s3 = inlined_call_operand.hbm [shape: f32[128,128], index: 3, kind: input, shape index: {}]   ;;  %s835_s4 = inlined_call_operand.vmem [shape: f32[1,128], index: 4, kind: input, shape index: {}]   ;;  %s836_s5 = inlined_call_operand.hbm [shape: f32[128,128], index: 5, kind: input, shape index: {}]   ;;  %s837_s6 = inlined_call_operand.vmem [shape: f32[1,128], index: 6, kind: input, shape index: {}]   ;;  %s838_s7 = inlined_call_operand.hbm [shape: f32[8,128], index: 7, kind: output, shape index: {}]  }
   0x1   :  { %13 = vsyncpa [#allocation6], 0 }
   0x2   :  { %14 = vsyncpa [#allocation9], 0 }
   0x3   :  { %15 = vsyncpa [#allocation4], 0  ;;  %s682_s24 = smov [#allocation5]   ;;  %s564_s28 = scalar_lea.hbm %s832_s1, 512 }
   0x4   :  { %s31_s25 = sshll.u32 %s682_s24, 4  ;;  %p565_p0 = scmp.ne.s32.totalorder %s832_s1, %s564_s28  ;;  %s32_s25 = int_to_ptr.vmem [resolvable:$true] %s31_s25 }
   0x5   :  { %p568_p1 = scmp.lt.u32.totalorder %s564_s28, %s832_s1 }
   0x7   :  { %p570_p2 = pnand %p568_p1, %p565_p0 }
   0x9   :  { %573 = shalt.err (!%p570_p2)
}
   0xa   :  { %s574_s10 = scalar_lea.vmem %s32_s25, 512  ;;  %p579_p4 = scmp.lt.s32.totalorder %s32_s25, %s32_s25 }
   0xb   :  { %p575_p3 = scmp.ne.s32.totalorder %s32_s25, %s574_s10  ;;  %p580_p5 = scmp.lt.s32.totalorder %s574_s10, %s574_s10 }
   0xd   :  { %p581_p6 = por %p580_p5, %p579_p4 }
   0xf   :  { %p582_p7 = pnand %p581_p6, %p575_p3 }
  0x11   :  { %585 = shalt.err (!%p582_p7)
}
  0x12   :  { %s683_s11 = smov 128   ;;  %s684_s12 = smov 8  }
  0x13   :  { %37 = dma.hbm_to_vmem [thread:$0]  %s832_s1, 512, %s32_s25, [#allocation6], %s683_s11, %s683_s11, %s684_s12  }
  0x14   :  { %s685_s15 = smov [#allocation2]   ;;  %s686_s17 = smov [#allocation7]  }
  0x15   :  { %s22_s16 = sshll.u32 %s685_s15, 4  ;;  %s45_s18 = sshll.u32 %s686_s17, 4  ;;  %s23_s16 = int_to_ptr.vmem [resolvable:$true] %s22_s16  ;;  %s46_s18 = int_to_ptr.vmem [resolvable:$true] %s45_s18 }
  0x16   :  { %s586_s21 = scalar_lea.hbm %s831_s0, 128 }
  0x17   :  { %p587_p8 = scmp.ne.s32.totalorder %s831_s0, %s586_s21  ;;  %p590_p9 = scmp.lt.u32.totalorder %s586_s21, %s831_s0 }
  0x19   :  { %p592_p10 = pnand %p590_p9, %p587_p8 }
  0x1b   :  { %595 = shalt.err (!%p592_p10)
}
  0x1c   :  { %s596_s1 = scalar_lea.vmem %s23_s16, 128  ;;  %p601_p12 = scmp.lt.s32.totalorder %s23_s16, %s23_s16 }
  0x1d   :  { %p597_p11 = scmp.ne.s32.totalorder %s23_s16, %s596_s1  ;;  %p602_p13 = scmp.lt.s32.totalorder %s596_s1, %s596_s1 }
  0x1f   :  { %p603_p0 = por %p602_p13, %p601_p12 }
  0x21   :  { %p604_p1 = pnand %p603_p0, %p597_p11 }
  0x23   :  { %607 = shalt.err (!%p604_p1)
}
  0x24   :  { %25 = dma.hbm_to_vmem [thread:$0]  %s831_s0, 128, %s23_s16, [#allocation3]  }
  0x25   :  { %s608_s30 = scalar_lea.hbm %s834_s3, 2048 }
  0x26   :  { %p609_p2 = scmp.ne.s32.totalorder %s834_s3, %s608_s30  ;;  %p612_p3 = scmp.lt.u32.totalorder %s608_s30, %s834_s3 }
  0x28   :  { %p614_p4 = pnand %p612_p3, %p609_p2 }
  0x2a   :  { %617 = shalt.err (!%p614_p4)
}
  0x2b   :  { %s618_s14 = scalar_lea.vmem %s46_s18, 2048  ;;  %p623_p6 = scmp.lt.s32.totalorder %s46_s18, %s46_s18 }
  0x2c   :  { %p619_p5 = scmp.ne.s32.totalorder %s46_s18, %s618_s14  ;;  %p624_p7 = scmp.lt.s32.totalorder %s618_s14, %s618_s14 }
  0x2e   :  { %p625_p8 = por %p624_p7, %p623_p6 }
  0x30   :  { %p626_p9 = pnand %p625_p8, %p619_p5 }
  0x32   :  { %629 = shalt.err (!%p626_p9)
}
  0x33   :  { %51 = dma.hbm_to_vmem [thread:$0]  %s834_s3, 2048, %s46_s18, [#allocation6], %s683_s11, %s683_s11, %s684_s12  }
  0x34   :  { %s687_s16 = smov [#allocation8]   ;;  %s630_s21 = scalar_lea.hbm %s836_s5, 2048 }
  0x35   :  { %s59_s17 = sshll.u32 %s687_s16, 4  ;;  %p631_p10 = scmp.ne.s32.totalorder %s836_s5, %s630_s21  ;;  %s60_s17 = int_to_ptr.vmem [resolvable:$true] %s59_s17 }
  0x36   :  { %p634_p11 = scmp.lt.u32.totalorder %s630_s21, %s836_s5 }
  0x38   :  { %p636_p12 = pnand %p634_p11, %p631_p10 }
  0x3a   :  { %639 = shalt.err (!%p636_p12)
}
  0x3b   :  { %s640_s1 = scalar_lea.vmem %s60_s17, 2048  ;;  %p645_p0 = scmp.lt.s32.totalorder %s60_s17, %s60_s17 }
  0x3c   :  { %p641_p13 = scmp.ne.s32.totalorder %s60_s17, %s640_s1  ;;  %p646_p1 = scmp.lt.s32.totalorder %s640_s1, %s640_s1 }
  0x3e   :  { %p647_p2 = por %p646_p1, %p645_p0 }
  0x40   :  { %p648_p3 = pnand %p647_p2, %p641_p13 }
  0x42   :  { %651 = shalt.err (!%p648_p3)
}
  0x43   :  { %65 = dma.hbm_to_vmem [thread:$0]  %s836_s5, 2048, %s60_s17, [#allocation9], %s683_s11, %s683_s11, %s684_s12  }
  0x44   :  { %674 = dma.done.wait [#allocation3], 128  }
  0x45   :  { %675 = vsyncadd [#allocation3], 4294967168 }
  0x46   :  { %676 = dma.done.wait [#allocation6], 2560  }
  0x47   :  { %677 = vsyncadd [#allocation6], 4294964736 }
  0x48   :  { %678 = dma.done.wait [#allocation9], 2048  }
  0x49   :  { %679 = vsyncadd [#allocation9], 4294965248  ;;  %v688_v0 = vmov 0.0|0.0   ;;  %vm689_vm0 = vmmov 0   ;;  %v690_v1 = vmov 0.0   ;;  %v81_v2 = vld [vmem:[#allocation5] sm:$0xff] }
  0x4a   :  { %496 = vmatprep.subr.bf16.mxu0 %v688_v0  ;;  %423 = vmatprep.mubr.msk.f32.mxu0 %vm689_vm0, %v690_v1  ;;  %v82_v3 = vld [vmem:[#allocation5 + $0x8] sm:$0xff]  ;;  %v83_v4 = vld [vmem:[#allocation5 + $0x10] sm:$0xff]  ;;  %v84_v6 = vld [vmem:[#allocation5 + $0x18] sm:$0xff]  ;;  %vm92_vm1 = vcmask 261120   ;;  %s691_s28 = smov [#allocation10]  }
  0x4b   :  { %502 = vmatprep.subr.bf16.mxu1 %v688_v0  ;;  %458 = vmatprep.mubr.msk.f32.mxu1 %vm689_vm0, %v690_v1  ;;  %v497_v5 = vpack.c.bf16 %v82_v3, %v81_v2  ;;  %v167_v7 = vld [vmem:[#allocation7] sm:$0xff]  ;;  %v168_v8 = vld [vmem:[#allocation7 + $0x8] sm:$0xff]  ;;  %v169_v9 = vld [vmem:[#allocation7 + $0x10] sm:$0xff]  ;;  %v500_v11 = vpack.c.bf16 %v84_v6, %v83_v4  ;;  %s361_s29 = sshll.u32 %s691_s28, 4  ;;  %s362_s29 = int_to_ptr.vmem [resolvable:$true] %s361_s29 }
  0x4c   :  { %v170_v10 = vld [vmem:[#allocation7 + $0x18] sm:$0xff]  ;;  %v503_v12 = vpack.c.bf16 %v168_v8, %v167_v7  ;;  %v171_v14 = vld [vmem:[#allocation7 + $0x20] sm:$0xff]  ;;  %v172_v15 = vld [vmem:[#allocation7 + $0x28] sm:$0xff]  ;;  %s652_s30 = scalar_lea.vmem %s362_s29, 128  ;;  %p657_p5 = scmp.lt.s32.totalorder %s362_s29, %s362_s29 }
  0x4d   :  { %498 = vmatpush3.bf16.msra.mxu0 %v497_v5  ;;  %v506_v13 = vpack.c.bf16 %v170_v10, %v169_v9  ;;  %v80_v16 = vld [vmem:[#allocation2] sm:$0xff]  ;;  %v509_v17 = vpack.c.bf16 %v172_v15, %v171_v14  ;;  %v173_v18 = vld [vmem:[#allocation7 + $0x30] sm:$0xff]  ;;  %v175_v21 = vld [vmem:[#allocation7 + $0x40] sm:$0xff]  ;;  %p653_p4 = scmp.ne.s32.totalorder %s362_s29, %s652_s30  ;;  %p658_p6 = scmp.lt.s32.totalorder %s652_s30, %s652_s30 }
  0x4e   :  { %499 = vmatprep.subr.bf16.mxu0 %v688_v0  ;;  %504 = vmatpush3.bf16.msra.mxu1 %v503_v12  ;;  %v174_v19 = vld [vmem:[#allocation7 + $0x38] sm:$0xff]  ;;  %v176_v22 = vld [vmem:[#allocation7 + $0x48] sm:$0xff]  ;;  %v177_v24 = vld [vmem:[#allocation7 + $0x50] sm:$0xff] }
  0x4f   :  { %505 = vmatprep.subr.bf16.mxu1 %v688_v0  ;;  %v512_v20 = vpack.c.bf16 %v174_v19, %v173_v18  ;;  %v515_v23 = vpack.c.bf16 %v176_v22, %v175_v21  ;;  %v178_v25 = vld [vmem:[#allocation7 + $0x58] sm:$0xff]  ;;  %v179_v27 = vld [vmem:[#allocation7 + $0x60] sm:$0xff]  ;;  %v180_v28 = vld [vmem:[#allocation7 + $0x68] sm:$0xff]  ;;  %p659_p7 = por %p658_p6, %p657_p5 }
  0x50   :  { %v518_v26 = vpack.c.bf16 %v178_v25, %v177_v24  ;;  %v521_v29 = vpack.c.bf16 %v180_v28, %v179_v27  ;;  %v181_v30 = vld [vmem:[#allocation7 + $0x70] sm:$0xff]  ;;  %v182_v31 = vld [vmem:[#allocation7 + $0x78] sm:$0xff]  ;;  %v261_v33 = vld [vmem:[#allocation8] sm:$0xff] }
  0x51   :  { %501 = vmatpush3.bf16.msra.mxu0 %v500_v11  ;;  %v524_v32 = vpack.c.bf16 %v182_v31, %v181_v30  ;;  %v262_v34 = vld [vmem:[#allocation8 + $0x8] sm:$0xff]  ;;  %v263_v35 = vld [vmem:[#allocation8 + $0x10] sm:$0xff]  ;;  %v264_v37 = vld [vmem:[#allocation8 + $0x18] sm:$0xff]  ;;  %p660_p8 = pnand %p659_p7, %p653_p4 }
  0x52   :  { %526 = vmatprep.subr.bf16.mxu0 %v688_v0  ;;  %507 = vmatpush3.bf16.msra.mxu1 %v506_v13  ;;  %v527_v36 = vpack.c.bf16 %v262_v34, %v261_v33  ;;  %v530_v38 = vpack.c.bf16 %v264_v37, %v263_v35  ;;  %v265_v39 = vld [vmem:[#allocation8 + $0x20] sm:$0xff]  ;;  %v266_v40 = vld [vmem:[#allocation8 + $0x28] sm:$0xff]  ;;  %v267_v42 = vld [vmem:[#allocation8 + $0x30] sm:$0xff] }
  0x53   :  { %508 = vmatprep.subr.bf16.mxu1 %v688_v0  ;;  %v533_v41 = vpack.c.bf16 %v266_v40, %v265_v39  ;;  %v268_v43 = vld [vmem:[#allocation8 + $0x38] sm:$0xff]  ;;  %v269_v45 = vld [vmem:[#allocation8 + $0x40] sm:$0xff]  ;;  %v270_v46 = vld [vmem:[#allocation8 + $0x48] sm:$0xff] }
  0x54   :  { %424 = vmatmul.mubr.msk.f32.vlgmr.msra.gmra.mrb[0].mxu0 %vm92_vm1, %v80_v16  ;;  %v536_v44 = vpack.c.bf16 %v268_v43, %v267_v42  ;;  %v539_v47 = vpack.c.bf16 %v270_v46, %v269_v45  ;;  %v372_v48 = vld [vmem:[%s833_s2] ss:$0 sm:$0xff]  ;;  %v271_v53 = vld [vmem:[#allocation8 + $0x50] sm:$0xff]  ;;  %v273_v56 = vld [vmem:[#allocation8 + $0x60] sm:$0xff] }
  0x55   :  { %493 = vmatprep.mubr.msk.f32.mxu0 %vm689_vm0, %v690_v1  ;;  %528 = vmatpush3.bf16.msra.mxu0 %v527_v36  ;;  %v272_v54 = vld [vmem:[#allocation8 + $0x58] sm:$0xff]  ;;  %v274_v57 = vld [vmem:[#allocation8 + $0x68] sm:$0xff]  ;;  %v275_v59 = vld [vmem:[#allocation8 + $0x70] sm:$0xff] }
  0x56   :  { %510 = vmatpush3.bf16.msra.mxu1 %v509_v17  ;;  %529 = vmatprep.subr.bf16.mxu0 %v688_v0  ;;  %v542_v55 = vpack.c.bf16 %v272_v54, %v271_v53  ;;  %v545_v58 = vpack.c.bf16 %v274_v57, %v273_v56  ;;  %v276_v60 = vld [vmem:[#allocation8 + $0x78] sm:$0xff] }
  0x57   :  { %511 = vmatprep.subr.bf16.mxu1 %v688_v0  ;;  %v548_v61 = vpack.c.bf16 %v276_v60, %v275_v59  ;;  %v374_v62 = vld [vmem:[%s835_s4] ss:$0 sm:$0xff] }
  0x58   :  { %v375_v4 = vld [vmem:[%s837_s6] ss:$0 sm:$0xff] }
  0x59   :  { %531 = vmatpush3.bf16.msra.mxu0 %v530_v38 }
  0x5a   :  { %513 = vmatpush3.bf16.msra.mxu1 %v512_v20  ;;  %532 = vmatprep.subr.bf16.mxu0 %v688_v0 }
  0x5b   :  { %514 = vmatprep.subr.bf16.mxu1 %v688_v0 }
  0x5d   :  { %534 = vmatpush3.bf16.msra.mxu0 %v533_v41 }
  0x5e   :  { %516 = vmatpush3.bf16.msra.mxu1 %v515_v23  ;;  %535 = vmatprep.subr.bf16.mxu0 %v688_v0 }
  0x5f   :  { %517 = vmatprep.subr.bf16.mxu1 %v688_v0 }
  0x61   :  { %537 = vmatpush3.bf16.msra.mxu0 %v536_v44 }
  0x62   :  { %519 = vmatpush3.bf16.msra.mxu1 %v518_v26  ;;  %538 = vmatprep.subr.bf16.mxu0 %v688_v0 }
  0x63   :  { %520 = vmatprep.subr.bf16.mxu1 %v688_v0 }
  0x65   :  { %540 = vmatpush3.bf16.msra.mxu0 %v539_v47 }
  0x66   :  { %522 = vmatpush3.bf16.msra.mxu1 %v521_v29  ;;  %541 = vmatprep.subr.bf16.mxu0 %v688_v0 }
  0x67   :  { %523 = vmatprep.subr.bf16.mxu1 %v688_v0 }
  0x69   :  { %543 = vmatpush3.bf16.msra.mxu0 %v542_v55 }
  0x6a   :  { %525 = vmatpush3.bf16.msra.mxu1 %v524_v32  ;;  %544 = vmatprep.subr.bf16.mxu0 %v688_v0 }
  0x6d   :  { %546 = vmatpush3.bf16.msra.mxu0 %v545_v58 }
  0x6e   :  { %547 = vmatprep.subr.bf16.mxu0 %v688_v0 }
  0x71   :  { %549 = vmatpush3.bf16.msra.mxu0 %v548_v61 }
 0x127   :  { %v162_v49 = vpop.f32.mrb[0].mxu0 }
 0x128   :  { %v163_v50 = vadd.f32 %v372_v48, %v162_v49  ;;  %v425_v51 = vpop.f32.mrb[1].mxu0 }
 0x12a   :  { %560 = vtanh.f32 %v163_v50 }
 0x134   :  { %v561_v52 = vpop.eup %560 }
 0x135   :  { %459 = vmatmul.mubr.f32.vlgmr.msra.gmra.mrb[0].mxu1 %v561_v52 }
 0x208   :  { %v256_v63 = vpop.f32.mrb[0].mxu1 }
 0x209   :  { %v257_v1 = vadd.f32 %v374_v62, %v256_v63  ;;  %v460_v2 = vpop.f32.mrb[1].mxu1 }
 0x20b   :  { %562 = vtanh.f32 %v257_v1 }
 0x215   :  { %v563_v3 = vpop.eup %562 }
 0x216   :  { %494 = vmatmul.mubr.f32.vlgmr.msra.gmra.mrb[2].mxu0 %v563_v3 }
 0x2e9   :  { %v350_v5 = vpop.f32.mrb[2].mxu0 }
 0x2ea   :  { %v351_v6 = vadd.f32 %v375_v4, %v350_v5  ;;  %v495_v0 = vpop.f32.mrb[3].mxu0 }
 0x2ec   :  { %354 = vst [vmem:[#allocation10] sm:$0xff] %v351_v6 }
 0x2ed   :  { %663 = shalt.err (!%p660_p8)
}
 0x2ee   :  { %s664_s9 = scalar_lea.hbm %s838_s7, 128 }
 0x2ef   :  { %p665_p9 = scmp.ne.s32.totalorder %s838_s7, %s664_s9  ;;  %p668_p10 = scmp.lt.u32.totalorder %s664_s9, %s838_s7 }
 0x2f1   :  { %p670_p11 = pnand %p668_p10, %p665_p9 }
 0x2f3   :  { %673 = shalt.err (!%p670_p11)
}
 0x2f4   :  { %364 = dma.vmem_to_hbm [thread:$0]  %s362_s29, 128, %s838_s7, [#allocation4]  }
 0x2f5   :  { %680 = dma.done.wait [#allocation4], 128  }
 0x2f6   :  { %681 = vsyncadd [#allocation4], 4294967168 }
 0x2f7   :  { %368 = vsyncpa [#allocation3], 1 }
 0x2f8   :  { %369 = vsyncpa [#allocation6], 1 }
 0x2f9   :  { %370 = vsyncpa [#allocation9], 1 }
 0x2fa   :  { %371 = vsyncpa [#allocation4], 1 }

</bundles_post_ra>
